<compile_context>
chip_gen: v7x
topology: tpu7x:2x2x1
jax: 0.10.0
libtpu: 0.0.40
codegen_flags: <defaults>
</compile_context>

<pallas_src>
import jax
import jax.numpy as jnp
from jax.experimental import pallas as pl
from jax.experimental.pallas import tpu as pltpu


def _identity_kernel(x_ref, o_ref):
    # Pure pass-through: copy the current VMEM tile to the output tile.
    o_ref[...] = x_ref[...]


# Widest lane-dense column counts we try (all multiples of 128).
_LANE_CANDIDATES = (4096, 2048, 1024, 512, 256, 128)
# Per-buffer tile budget; with 2 inputs-bufs + 2 output-bufs this stays < 8 MiB,
# safe under every chip's default scoped-VMEM limit.
_TARGET_TILE_BYTES = 2 * 1024 * 1024


def _tiled_copy_2d(x2d: jax.Array) -> jax.Array:
    """Tiled HBM->HBM copy of a 2-D slab whose last dim is a multiple of 128."""
    rows, cols = x2d.shape
    itemsize = jnp.dtype(x2d.dtype).itemsize

    # Largest multiple-of-32 row count whose tile fits the per-buffer budget
    # (multiple of 32 keeps the sublane constraint satisfied for any dtype).
    max_block_rows = max(32, (_TARGET_TILE_BYTES // (cols * itemsize)) // 32 * 32)
    # Either a single full-extent block (block == array dim, always legal) or a
    # (multiple-of-32, multiple-of-128) tile; ragged last blocks are handled by
    # Pallas edge masking.
    block_rows = rows if rows <= max_block_rows else max_block_rows
    grid = (pl.cdiv(rows, block_rows),)

    return pl.pallas_call(
        _identity_kernel,
        out_shape=jax.ShapeDtypeStruct((rows, cols), x2d.dtype),
        grid=grid,
        in_specs=[pl.BlockSpec((block_rows, cols), lambda i: (i, 0))],
        out_specs=pl.BlockSpec((block_rows, cols), lambda i: (i, 0)),
        compiler_params=pltpu.CompilerParams(
            dimension_semantics=("parallel",),      # v7x: shard rows over 2 TCs
            vmem_limit_bytes=32 * 1024 * 1024,      # explicit, safe on v5e..v7x
        ),
    )(x2d)


@jax.jit
def identity(x: jax.Array) -> jax.Array:
    """Pallas identity: returns an array equal to x (same shape/dtype)."""
    orig_shape = x.shape
    n = x.size
    if n == 0:
        return x

    # Preferred path: no padding at all.  Pick the widest lane-dense column
    # count (multiple of 128) that divides the flattened size exactly; the
    # reshapes are layout-preserving metadata ops (no extra HBM copies).
    cols = next((c for c in _LANE_CANDIDATES if n % c == 0), None)
    if cols is not None:
        out2d = _tiled_copy_2d(x.reshape(n // cols, cols))
        return out2d.reshape(orig_shape)

    # Fallback (only for sizes not divisible by 128): pad the flat array up to
    # an (8, 128)-tileable slab, copy, and slice the valid prefix back out.
    cols = 128
    rows = pl.cdiv(n, cols)
    rows_padded = pl.cdiv(rows, 8) * 8
    flat_padded = jnp.pad(x.reshape(-1), (0, rows_padded * cols - n))
    out2d = _tiled_copy_2d(flat_padded.reshape(rows_padded, cols))
    return out2d.reshape(-1)[:n].reshape(orig_shape)


if __name__ == "__main__":
    key = jax.random.PRNGKey(0)
    # Small NCHW input consistent with a conv-style module: batch=2, C=4, 16x16.
    x = jax.random.normal(key, (2, 4, 16, 16), dtype=jnp.float32)

    y = identity(x)
    jax.block_until_ready(y)

    assert y.shape == x.shape, (y.shape, x.shape)
    assert y.dtype == x.dtype, (y.dtype, x.dtype)
    assert jnp.array_equal(y, x), "identity output mismatch"

    print("KERNEL_OK")
</pallas_src>

<mosaic_0001>
module attributes {stable_mosaic.version = 11 : i64} {
  func.func @_identity_kernel(%arg0: i32, %arg1: memref<1x2048xf32, #tpu.memory_space<vmem>>, %arg2: memref<1x2048xf32, #tpu.memory_space<vmem>>) attributes {dimension_semantics = [#tpu.dimension_semantics<parallel>], iteration_bounds = array<i64: 1>, scalar_prefetch = 0 : i64, scratch_operands = 0 : i64, tpu.core_type = #tpu.core_type<tc>, window_params = [{transform_indices = @transform_0, window_bounds = array<i64: 1, 2048>}, {transform_indices = @transform_1, window_bounds = array<i64: 1, 2048>}]} {
    %c0 = arith.constant 0 : index
    %c0_0 = arith.constant 0 : index
    %0 = vector.load %arg1[%c0, %c0_0] : memref<1x2048xf32, #tpu.memory_space<vmem>>, vector<1x2048xf32>
    %c0_1 = arith.constant 0 : index
    %c0_2 = arith.constant 0 : index
    %1 = vector.load %arg2[%c0_1, %c0_2] : memref<1x2048xf32, #tpu.memory_space<vmem>>, vector<1x2048xf32>
    tpu.vector_store %arg2[%c0_1, %c0_2], %0 {strides = array<i32>} : memref<1x2048xf32, #tpu.memory_space<vmem>>, vector<1x2048xf32>,
    return
  }
  func.func @transform_0(%arg0: i32) -> (i32, i32) {
    %c0_i32 = arith.constant 0 : i32
    %c0_i32_0 = arith.constant 0 : i32
    return %arg0, %c0_i32 : i32, i32
  }
  func.func @transform_1(%arg0: i32) -> (i32, i32) {
    %c0_i32 = arith.constant 0 : i32
    %c0_i32_0 = arith.constant 0 : i32
    return %arg0, %c0_i32 : i32, i32
  }
}

</mosaic_0001>

<bundles_post_ra>
// kernel: identity.1
= control target key start
LH: loop header
LB: loop body
LE: loop exit
PB: predicated region body
PF: predicated region fallthrough
CT: control target
= control target key end

     0   :  { %s38_s0 = inlined_call_operand.vmem [shape: f32[1,2048], index: 0, kind: input, shape index: {}]   ;;  %s39_s1 = inlined_call_operand.vmem [shape: f32[1,2048], index: 1, kind: output, shape index: {}]  }
   0x1   :  { %v8_v0 = vld [vmem:[%s38_s0] sm:$0xff]  ;;  %v9_v1 = vld [vmem:[%s38_s0 + $0x8] sm:$0xff] }
   0x2   :  { %10 = vst [vmem:[%s39_s1] sm:$0xff] %v8_v0  ;;  %11 = vst [vmem:[%s39_s1 + $0x8] sm:$0xff] %v9_v1 }

</bundles_post_ra>
